<compile_context>
chip_gen: v5e
topology: v5e:2x2
jax: 0.10.0
libtpu: 0.0.40
codegen_flags: <defaults>
</compile_context>

<pallas_src>
import functools

import numpy as np
import jax
import jax.numpy as jnp
from jax.experimental import pallas as pl
from jax.experimental.pallas import tpu as pltpu

EPS = 1e-5
_SUBLANE = 8


def _resblock_kernel(n_true, xf_ref, w1_ref, w2_ref, g1_ref, bf1_ref,
                     g2_ref, bf2_ref, sel_ref, o_ref):
    xf = xf_ref[...]                           # (Npad, L*C) f32, channel fastest
    sel = sel_ref[...]                         # (L*C, C) selector, pre-scaled by 1/(N*L)
    lc = xf.shape[1]
    c = sel.shape[1]
    L = lc // c

    def bn_relu(v, gamma, beta_flat):
        # Pass 1: per-channel mean — one MXU matmul + tiny sublane reduce over real rows.
        mrows = jnp.dot(v, sel, preferred_element_type=jnp.float32)        # (Npad, C)
        mean = jnp.sum(mrows[:n_true], axis=0, keepdims=True)              # (1, C)
        vc = v - jnp.tile(mean, (1, L))                                    # center (tile->XLU, sub->VPU)
        # Pass 2: centered variance (no E[x^2]-mean^2 cancellation) — one MXU matmul.
        vrows = jnp.dot(vc * vc, sel, preferred_element_type=jnp.float32)  # (Npad, C)
        var = jnp.sum(vrows[:n_true], axis=0, keepdims=True)               # (1, C) biased var
        scale = gamma * jax.lax.rsqrt(var + EPS)                           # (1, C)  EUP rsqrt
        # Normalize: single fma + relu per element; beta_flat pre-tiled in wrapper.
        return jnp.maximum(vc * jnp.tile(scale, (1, L)) + beta_flat, 0.0)

    # bn1 -> relu -> conv1 (single block-circulant MXU matmul, bf16 in / f32 acc)
    h = bn_relu(xf, g1_ref[...], bf1_ref[...])
    h = jnp.dot(h.astype(jnp.bfloat16), w1_ref[...], preferred_element_type=jnp.float32)
    # bn2 -> relu -> conv2
    h = bn_relu(h, g2_ref[...], bf2_ref[...])
    h = jnp.dot(h.astype(jnp.bfloat16), w2_ref[...], preferred_element_type=jnp.float32)
    # residual add + lane-dense (128-wide) store
    o_ref[...] = (h + xf).astype(o_ref.dtype)


def _circulant_conv_weights(w_ock, L):
    """(Cout, Cin, K) PyTorch Conv1d weight (padding=K//2, circular, bias=False) ->
    (L*Cin, L*Cout) block-circulant matrix acting on the channel-fastest flat layout:
        out[n, l2*Cout + co] = sum_{l, ci} x[n, l*Cin + ci] * W[l*Cin + ci, l2*Cout + co]
    """
    cout, cin, k = w_ock.shape
    assert k % 2 == 1, "length-preserving circular conv requires odd kernel_size"
    assert k <= L, "kernel_size must not exceed the sequence length"
    pad = k // 2
    w_kio = jnp.transpose(w_ock, (2, 1, 0)).astype(jnp.float32)        # (K, Cin, Cout)
    w_pad = jnp.concatenate(
        [w_kio, jnp.zeros((L - k, cin, cout), jnp.float32)], axis=0)   # (L, Cin, Cout)
    l_idx = jnp.arange(L)
    tap = (l_idx[:, None] - l_idx[None, :] + pad) % L                  # (L, L) tap index
    blocks = w_pad[tap]                                                # (L, L, Cin, Cout)
    return jnp.transpose(blocks, (0, 2, 1, 3)).reshape(L * cin, L * cout)


def prepare_resblock_params(w1_ock, g1, b1, w2_ock, g2, b2, *, L, batch):
    """Hoisted one-time parameter prep (circulant expansion, bf16 cast, constants)."""
    C = w1_ock.shape[0]
    assert (w1_ock.shape[0] == w1_ock.shape[1] == C
            and w2_ock.shape[0] == w2_ock.shape[1] == C), \
        "residual ResBlock requires in_channels == out_channels"
    LC = L * C
    inv_count = 1.0 / (batch * L)
    # lane j of the flat layout holds channel (j % C); fold 1/(N*L) into the selector.
    sel = (jnp.arange(LC, dtype=jnp.int32)[:, None] % C
           == jnp.arange(C, dtype=jnp.int32)[None, :]).astype(jnp.float32) * inv_count
    return dict(
        w1=_circulant_conv_weights(w1_ock, L).astype(jnp.bfloat16),   # (L*C, L*C) bf16
        w2=_circulant_conv_weights(w2_ock, L).astype(jnp.bfloat16),
        g1=g1.reshape(1, C).astype(jnp.float32),
        g2=g2.reshape(1, C).astype(jnp.float32),
        bf1=jnp.tile(b1.reshape(1, C).astype(jnp.float32), (1, L)),   # pre-tiled beta (1, L*C)
        bf2=jnp.tile(b2.reshape(1, C).astype(jnp.float32), (1, L)),
        sel=sel,                                                       # (L*C, C)
    )


@jax.jit
def resblock_apply(x_ncl, params):
    """x_ncl: (N, C, L) PyTorch layout; params from prepare_resblock_params."""
    N, C, L = x_ncl.shape
    LC = L * C
    NPAD = ((N + _SUBLANE - 1) // _SUBLANE) * _SUBLANE   # full sublane tiles

    # ---- wrapper-side layout plumbing (never done inside the kernel) ----
    xf = jnp.transpose(x_ncl, (0, 2, 1)).reshape(N, LC).astype(jnp.float32)
    if NPAD != N:
        xf = jnp.pad(xf, ((0, NPAD - N), (0, 0)))        # zero rows; stats only use real N

    flops = (2 * (2 * NPAD * LC * LC)          # two conv matmuls
             + 4 * (2 * NPAD * LC * C)         # four BN stats matmuls (mean + var, x2 BN)
             + 14 * NPAD * LC)                 # center / square / fma / relu / residual
    bytes_accessed = (4 * 2 * NPAD * LC        # activations in/out (f32)
                      + 2 * 2 * LC * LC        # bf16 conv weights
                      + 4 * LC * C             # selector
                      + 4 * (2 * C + 2 * LC))  # gammas + pre-tiled betas

    vmem = pl.BlockSpec(memory_space=pltpu.MemorySpace.VMEM)
    out_flat = pl.pallas_call(
        functools.partial(_resblock_kernel, N),
        out_shape=jax.ShapeDtypeStruct((NPAD, LC), x_ncl.dtype),
        in_specs=[vmem] * 8,
        out_specs=vmem,
        cost_estimate=pl.CostEstimate(flops=flops, transcendentals=2 * C,
                                      bytes_accessed=bytes_accessed),
        compiler_params=pltpu.CompilerParams(vmem_limit_bytes=32 * 1024 * 1024),
    )(xf, params["w1"], params["w2"], params["g1"], params["bf1"],
      params["g2"], params["bf2"], params["sel"])

    out_flat = out_flat[:N]                                           # drop padded rows
    return jnp.transpose(out_flat.reshape(N, L, C), (0, 2, 1))        # back to (N, C, L)


def _reference(x_ncl, w1, g1, b1, w2, g2, b2):
    """Pure-JAX reference matching PyTorch ResBlock.forward (training-mode BN)."""
    def bn_relu(v, gamma, beta):                  # v: (N, C, L)
        mean = jnp.mean(v, axis=(0, 2), keepdims=True)
        var = jnp.var(v, axis=(0, 2), keepdims=True)
        y = (v - mean) / jnp.sqrt(var + EPS)
        y = y * gamma[None, :, None] + beta[None, :, None]
        return jnp.maximum(y, 0.0)

    def circ_conv(v, w):                          # v: (N, Cin, L), w: (O, Cin, K)
        K = w.shape[-1]
        pad = K // 2
        vpad = jnp.concatenate([v[:, :, -pad:], v, v[:, :, :pad]], axis=-1)
        return jax.lax.conv_general_dilated(
            vpad, w, window_strides=(1,), padding="VALID",
            dimension_numbers=("NCH", "OIH", "NCH"))

    h = bn_relu(x_ncl, g1, b1)
    h = circ_conv(h, w1)
    h = bn_relu(h, g2, b2)
    h = circ_conv(h, w2)
    return h + x_ncl


if __name__ == "__main__":
    # ResBlock(in_channels=8, out_channels=8, kernel_size=5, stride=1, padding=2)
    N, C, L, K = 2, 8, 16, 5

    key = jax.random.PRNGKey(0)
    kx, kw1, kw2, kg1, kb1, kg2, kb2 = jax.random.split(key, 7)

    x = jax.random.normal(kx, (N, C, L), dtype=jnp.float32)
    # Conv1d weights: (Cout, Cin, K), bias=False
    w1 = 0.1 * jax.random.normal(kw1, (C, C, K), dtype=jnp.float32)
    w2 = 0.1 * jax.random.normal(kw2, (C, C, K), dtype=jnp.float32)
    # BatchNorm1d affine params (PyTorch init is gamma=1, beta=0; perturb deterministically)
    g1 = 1.0 + 0.1 * jax.random.normal(kg1, (C,), dtype=jnp.float32)
    b1 = 0.1 * jax.random.normal(kb1, (C,), dtype=jnp.float32)
    g2 = 1.0 + 0.1 * jax.random.normal(kg2, (C,), dtype=jnp.float32)
    b2 = 0.1 * jax.random.normal(kb2, (C,), dtype=jnp.float32)

    # Hoisted, call-once weight expansion / constant prep (perf-review item).
    params = prepare_resblock_params(w1, g1, b1, w2, g2, b2, L=L, batch=N)

    out = jax.block_until_ready(resblock_apply(x, params))
    ref = jax.block_until_ready(_reference(x, w1, g1, b1, w2, g2, b2))

    # bf16 conv weights/activations (f32 accumulation) => looser tolerance than pure f32.
    np.testing.assert_allclose(np.asarray(out), np.asarray(ref), rtol=2e-2, atol=2e-2)

    print("KERNEL_OK")
</pallas_src>

<mosaic_0001>
module attributes {stable_mosaic.version = 11 : i64} {
  func.func @_resblock_kernel(%arg0: memref<8x128xf32, #tpu.memory_space<vmem>>, %arg1: memref<128x128xbf16, #tpu.memory_space<vmem>>, %arg2: memref<128x128xbf16, #tpu.memory_space<vmem>>, %arg3: memref<1x8xf32, #tpu.memory_space<vmem>>, %arg4: memref<1x128xf32, #tpu.memory_space<vmem>>, %arg5: memref<1x8xf32, #tpu.memory_space<vmem>>, %arg6: memref<1x128xf32, #tpu.memory_space<vmem>>, %arg7: memref<128x8xf32, #tpu.memory_space<vmem>>, %arg8: memref<8x128xf32, #tpu.memory_space<vmem>>) attributes {dimension_semantics = [], scalar_prefetch = 0 : i64, scratch_operands = 0 : i64, tpu.core_type = #tpu.core_type<tc>} {
    %c0 = arith.constant 0 : index
    %c0_0 = arith.constant 0 : index
    %0 = vector.load %arg0[%c0, %c0_0] : memref<8x128xf32, #tpu.memory_space<vmem>>, vector<8x128xf32>
    %c0_1 = arith.constant 0 : index
    %c0_2 = arith.constant 0 : index
    %1 = vector.load %arg7[%c0_1, %c0_2] : memref<128x8xf32, #tpu.memory_space<vmem>>, vector<128x8xf32>
    %c0_3 = arith.constant 0 : index
    %c0_4 = arith.constant 0 : index
    %2 = vector.load %arg3[%c0_3, %c0_4] : memref<1x8xf32, #tpu.memory_space<vmem>>, vector<1x8xf32>
    %c0_5 = arith.constant 0 : index
    %c0_6 = arith.constant 0 : index
    %3 = vector.load %arg4[%c0_5, %c0_6] : memref<1x128xf32, #tpu.memory_space<vmem>>, vector<1x128xf32>
    %cst = arith.constant dense<0.000000e+00> : vector<8x8xf32>
    %4 = tpu.matmul %0, %1, %cst {dimension_numbers = #tpu.dot_dimension_numbers<[1], [0], [0], [1], [0, 0, 1, 1], [], []>} : vector<8x128xf32>, vector<128x8xf32>, vector<8x8xf32> -> vector<8x8xf32>
    %5 = vector.extract_strided_slice %4 {offsets = [0, 0], sizes = [2, 8], strides = [1, 1]} : vector<8x8xf32> to vector<2x8xf32>
    %cst_7 = arith.constant dense<0.000000e+00> : vector<8xf32>
    %6 = vector.multi_reduction <add>, %5, %cst_7 [0] : vector<2x8xf32> to vector<8xf32>
    %7 = vector.shape_cast %6 : vector<8xf32> to vector<1x8xf32>
    %8 = tpu.concatenate %7, %7, %7, %7, %7, %7, %7, %7, %7, %7, %7, %7, %7, %7, %7, %7 in 1 : vector<1x8xf32>, vector<1x8xf32>, vector<1x8xf32>, vector<1x8xf32>, vector<1x8xf32>, vector<1x8xf32>, vector<1x8xf32>, vector<1x8xf32>, vector<1x8xf32>, vector<1x8xf32>, vector<1x8xf32>, vector<1x8xf32>, vector<1x8xf32>, vector<1x8xf32>, vector<1x8xf32>, vector<1x8xf32> -> vector<1x128xf32>
    %9 = vector.broadcast %8 : vector<1x128xf32> to vector<8x128xf32>
    %10 = arith.subf %0, %9 : vector<8x128xf32>
    %11 = arith.mulf %10, %10 : vector<8x128xf32>
    %cst_8 = arith.constant dense<0.000000e+00> : vector<8x8xf32>
    %12 = tpu.matmul %11, %1, %cst_8 {dimension_numbers = #tpu.dot_dimension_numbers<[1], [0], [0], [1], [0, 0, 1, 1], [], []>} : vector<8x128xf32>, vector<128x8xf32>, vector<8x8xf32> -> vector<8x8xf32>
    %13 = vector.extract_strided_slice %12 {offsets = [0, 0], sizes = [2, 8], strides = [1, 1]} : vector<8x8xf32> to vector<2x8xf32>
    %cst_9 = arith.constant dense<0.000000e+00> : vector<8xf32>
    %14 = vector.multi_reduction <add>, %13, %cst_9 [0] : vector<2x8xf32> to vector<8xf32>
    %15 = vector.shape_cast %14 : vector<8xf32> to vector<1x8xf32>
    %cst_10 = arith.constant 9.99999974E-6 : f32
    %16 = vector.broadcast %cst_10 : f32 to vector<1x8xf32>
    %17 = arith.addf %15, %16 : vector<1x8xf32>
    %18 = math.rsqrt %17 : vector<1x8xf32>
    %19 = arith.mulf %2, %18 : vector<1x8xf32>
    %20 = tpu.concatenate %19, %19, %19, %19, %19, %19, %19, %19, %19, %19, %19, %19, %19, %19, %19, %19 in 1 : vector<1x8xf32>, vector<1x8xf32>, vector<1x8xf32>, vector<1x8xf32>, vector<1x8xf32>, vector<1x8xf32>, vector<1x8xf32>, vector<1x8xf32>, vector<1x8xf32>, vector<1x8xf32>, vector<1x8xf32>, vector<1x8xf32>, vector<1x8xf32>, vector<1x8xf32>, vector<1x8xf32>, vector<1x8xf32> -> vector<1x128xf32>
    %21 = vector.broadcast %20 : vector<1x128xf32> to vector<8x128xf32>
    %22 = arith.mulf %10, %21 : vector<8x128xf32>
    %23 = vector.broadcast %3 : vector<1x128xf32> to vector<8x128xf32>
    %24 = arith.addf %22, %23 : vector<8x128xf32>
    %cst_11 = arith.constant 0.000000e+00 : f32
    %25 = vector.broadcast %cst_11 : f32 to vector<8x128xf32>
    %26 = arith.maximumf %24, %25 : vector<8x128xf32>
    %27 = arith.truncf %26 : vector<8x128xf32> to vector<8x128xbf16>
    %c0_12 = arith.constant 0 : index
    %c0_13 = arith.constant 0 : index
    %28 = vector.load %arg1[%c0_12, %c0_13] : memref<128x128xbf16, #tpu.memory_space<vmem>>, vector<128x128xbf16>
    %cst_14 = arith.constant dense<0.000000e+00> : vector<8x128xf32>
    %29 = tpu.matmul %27, %28, %cst_14 {dimension_numbers = #tpu.dot_dimension_numbers<[1], [0], [0], [1], [0, 0, 1, 1], [], []>} : vector<8x128xbf16>, vector<128x128xbf16>, vector<8x128xf32> -> vector<8x128xf32>
    %c0_15 = arith.constant 0 : index
    %c0_16 = arith.constant 0 : index
    %30 = vector.load %arg5[%c0_15, %c0_16] : memref<1x8xf32, #tpu.memory_space<vmem>>, vector<1x8xf32>
    %c0_17 = arith.constant 0 : index
    %c0_18 = arith.constant 0 : index
    %31 = vector.load %arg6[%c0_17, %c0_18] : memref<1x128xf32, #tpu.memory_space<vmem>>, vector<1x128xf32>
    %cst_19 = arith.constant dense<0.000000e+00> : vector<8x8xf32>
    %32 = tpu.matmul %29, %1, %cst_19 {dimension_numbers = #tpu.dot_dimension_numbers<[1], [0], [0], [1], [0, 0, 1, 1], [], []>} : vector<8x128xf32>, vector<128x8xf32>, vector<8x8xf32> -> vector<8x8xf32>
    %33 = vector.extract_strided_slice %32 {offsets = [0, 0], sizes = [2, 8], strides = [1, 1]} : vector<8x8xf32> to vector<2x8xf32>
    %cst_20 = arith.constant dense<0.000000e+00> : vector<8xf32>
    %34 = vector.multi_reduction <add>, %33, %cst_20 [0] : vector<2x8xf32> to vector<8xf32>
    %35 = vector.shape_cast %34 : vector<8xf32> to vector<1x8xf32>
    %36 = tpu.concatenate %35, %35, %35, %35, %35, %35, %35, %35, %35, %35, %35, %35, %35, %35, %35, %35 in 1 : vector<1x8xf32>, vector<1x8xf32>, vector<1x8xf32>, vector<1x8xf32>, vector<1x8xf32>, vector<1x8xf32>, vector<1x8xf32>, vector<1x8xf32>, vector<1x8xf32>, vector<1x8xf32>, vector<1x8xf32>, vector<1x8xf32>, vector<1x8xf32>, vector<1x8xf32>, vector<1x8xf32>, vector<1x8xf32> -> vector<1x128xf32>
    %37 = vector.broadcast %36 : vector<1x128xf32> to vector<8x128xf32>
    %38 = arith.subf %29, %37 : vector<8x128xf32>
    %39 = arith.mulf %38, %38 : vector<8x128xf32>
    %cst_21 = arith.constant dense<0.000000e+00> : vector<8x8xf32>
    %40 = tpu.matmul %39, %1, %cst_21 {dimension_numbers = #tpu.dot_dimension_numbers<[1], [0], [0], [1], [0, 0, 1, 1], [], []>} : vector<8x128xf32>, vector<128x8xf32>, vector<8x8xf32> -> vector<8x8xf32>
    %41 = vector.extract_strided_slice %40 {offsets = [0, 0], sizes = [2, 8], strides = [1, 1]} : vector<8x8xf32> to vector<2x8xf32>
    %cst_22 = arith.constant dense<0.000000e+00> : vector<8xf32>
    %42 = vector.multi_reduction <add>, %41, %cst_22 [0] : vector<2x8xf32> to vector<8xf32>
    %43 = vector.shape_cast %42 : vector<8xf32> to vector<1x8xf32>
    %cst_23 = arith.constant 9.99999974E-6 : f32
    %44 = vector.broadcast %cst_23 : f32 to vector<1x8xf32>
    %45 = arith.addf %43, %44 : vector<1x8xf32>
    %46 = math.rsqrt %45 : vector<1x8xf32>
    %47 = arith.mulf %30, %46 : vector<1x8xf32>
    %48 = tpu.concatenate %47, %47, %47, %47, %47, %47, %47, %47, %47, %47, %47, %47, %47, %47, %47, %47 in 1 : vector<1x8xf32>, vector<1x8xf32>, vector<1x8xf32>, vector<1x8xf32>, vector<1x8xf32>, vector<1x8xf32>, vector<1x8xf32>, vector<1x8xf32>, vector<1x8xf32>, vector<1x8xf32>, vector<1x8xf32>, vector<1x8xf32>, vector<1x8xf32>, vector<1x8xf32>, vector<1x8xf32>, vector<1x8xf32> -> vector<1x128xf32>
    %49 = vector.broadcast %48 : vector<1x128xf32> to vector<8x128xf32>
    %50 = arith.mulf %38, %49 : vector<8x128xf32>
    %51 = vector.broadcast %31 : vector<1x128xf32> to vector<8x128xf32>
    %52 = arith.addf %50, %51 : vector<8x128xf32>
    %cst_24 = arith.constant 0.000000e+00 : f32
    %53 = vector.broadcast %cst_24 : f32 to vector<8x128xf32>
    %54 = arith.maximumf %52, %53 : vector<8x128xf32>
    %55 = arith.truncf %54 : vector<8x128xf32> to vector<8x128xbf16>
    %c0_25 = arith.constant 0 : index
    %c0_26 = arith.constant 0 : index
    %56 = vector.load %arg2[%c0_25, %c0_26] : memref<128x128xbf16, #tpu.memory_space<vmem>>, vector<128x128xbf16>
    %cst_27 = arith.constant dense<0.000000e+00> : vector<8x128xf32>
    %57 = tpu.matmul %55, %56, %cst_27 {dimension_numbers = #tpu.dot_dimension_numbers<[1], [0], [0], [1], [0, 0, 1, 1], [], []>} : vector<8x128xbf16>, vector<128x128xbf16>, vector<8x128xf32> -> vector<8x128xf32>
    %58 = arith.addf %57, %0 : vector<8x128xf32>
    %c0_28 = arith.constant 0 : index
    %c0_29 = arith.constant 0 : index
    %59 = vector.load %arg8[%c0_28, %c0_29] : memref<8x128xf32, #tpu.memory_space<vmem>>, vector<8x128xf32>
    tpu.vector_store %arg8[%c0_28, %c0_29], %58 {strides = array<i32>} : memref<8x128xf32, #tpu.memory_space<vmem>>, vector<8x128xf32>,
    return
  }
}

</mosaic_0001>

<bundles_post_ra>
// kernel: resblock_apply.1
= control target key start
LH: loop header
LB: loop body
LE: loop exit
PB: predicated region body
PF: predicated region fallthrough
CT: control target
= control target key end

     0   :  { %vm1049_vm0 = vcmask 58368   ;;  %s728_s17 = smov 8   ;;  %s729_s18 = smov 48   ;;  %vm122_vm1 = vcmask 64512   ;;  %vm124_vm2 = vcmask 130048   ;;  %vm126_vm3 = vcmask 195584   ;;  %s1039_s7 = inlined_call_operand.vmem [shape: f32[128,8], index: 7, kind: input, shape index: {}]   ;;  %s1040_s0 = inlined_call_operand.vmem [shape: f32[8,128], index: 0, kind: input, shape index: {}]   ;;  %s1041_s3 = inlined_call_operand.vmem [shape: f32[1,8], index: 3, kind: input, shape index: {}]   ;;  %s1042_s4 = inlined_call_operand.vmem [shape: f32[1,128], index: 4, kind: input, shape index: {}]   ;;  %s1043_s1 = inlined_call_operand.vmem [shape: bf16[128,128], index: 1, kind: input, shape index: {}]   ;;  %s1044_s5 = inlined_call_operand.vmem [shape: f32[1,8], index: 5, kind: input, shape index: {}]   ;;  %s1045_s6 = inlined_call_operand.vmem [shape: f32[1,128], index: 6, kind: input, shape index: {}]   ;;  %s1046_s2 = inlined_call_operand.vmem [shape: bf16[128,128], index: 2, kind: input, shape index: {}]   ;;  %s1047_s8 = inlined_call_operand.vmem [shape: f32[8,128], index: 8, kind: output, shape index: {}]  }
   0x1   :  { %v45_v0 = vld [vmem:[%s1039_s7 + $0x78] sm:$0xff]  ;;  %v44_v1 = vld [vmem:[%s1039_s7 + $0x70] sm:$0xff]  ;;  %v43_v2 = vld [vmem:[%s1039_s7 + $0x68] sm:$0xff]  ;;  %s730_s19 = smov 32   ;;  %s731_s20 = smov 16   ;;  %vm128_vm4 = vcmask 261120  }
   0x2   :  { %48 = vmatpush.msra.mxu0 %v45_v0  ;;  %155 = vmatpush.msra.mxu3 %v45_v0  ;;  %v42_v3 = vld [vmem:[%s1039_s7 + $0x60] sm:$0xff]  ;;  %v41_v4 = vld [vmem:[%s1039_s7 + $0x58] sm:$0xff]  ;;  %v40_v5 = vld [vmem:[%s1039_s7 + $0x50] sm:$0xff]  ;;  %s732_s21 = smov 72   ;;  %s733_s22 = smov 64   ;;  %vm130_vm5 = vcmask 326656  }
   0x3   :  { %v39_v6 = vld [vmem:[%s1039_s7 + $0x48] sm:$0xff]  ;;  %v38_v7 = vld [vmem:[%s1039_s7 + $0x40] sm:$0xff]  ;;  %v37_v8 = vld [vmem:[%s1039_s7 + $0x38] sm:$0xff]  ;;  %s734_s23 = smov 56   ;;  %s735_s24 = smov 96   ;;  %vm132_vm6 = vcmask 392192  }
   0x4   :  { %49 = vmatpush.msra.mxu0 %v44_v1  ;;  %156 = vmatpush.msra.mxu3 %v44_v1  ;;  %v36_v9 = vld [vmem:[%s1039_s7 + $0x30] sm:$0xff]  ;;  %v35_v10 = vld [vmem:[%s1039_s7 + $0x28] sm:$0xff]  ;;  %v34_v11 = vld [vmem:[%s1039_s7 + $0x20] sm:$0xff]  ;;  %s736_s25 = smov 88   ;;  %s737_s26 = smov 80   ;;  %vm134_vm7 = vcmask 457728  }
   0x5   :  { %v33_v12 = vld [vmem:[%s1039_s7 + $0x18] sm:$0xff]  ;;  %v32_v13 = vld [vmem:[%s1039_s7 + $0x10] sm:$0xff]  ;;  %v31_v14 = vld [vmem:[%s1039_s7 + $0x8] sm:$0xff]  ;;  %s738_s27 = smov 120   ;;  %s739_s28 = smov 112   ;;  %vm136_vm8 = vcmask 523264  }
   0x6   :  { %50 = vmatpush.msra.mxu0 %v43_v2  ;;  %157 = vmatpush.msra.mxu3 %v43_v2  ;;  %v30_v15 = vld [vmem:[%s1039_s7] sm:$0xff]  ;;  %s727_s7 = smov 24   ;;  %s740_s29 = smov 104   ;;  %vm138_vm9 = vcmask 588800   ;;  %vm140_vm10 = vcmask 654336   ;;  %vm142_vm11 = vcmask 719872  }
   0x7   :  { %v837_v16 = vld [vmem:[%s1040_s0] sm:$0xff]  ;;  %s726_s0 = smov 40   ;;  %vm144_vm12 = vcmask 785408   ;;  %vm146_vm13 = vcmask 850944   ;;  %vm1050_vm14 = vcmask 916480   ;;  %vm1048_vm15 = vcmask 982016  }
   0x8   :  { %51 = vmatpush.msra.mxu0 %v42_v3  ;;  %158 = vmatpush.msra.mxu3 %v42_v3 }
   0xa   :  { %52 = vmatpush.msra.mxu0 %v41_v4  ;;  %159 = vmatpush.msra.mxu3 %v41_v4 }
   0xc   :  { %53 = vmatpush.msra.mxu0 %v40_v5  ;;  %160 = vmatpush.msra.mxu3 %v40_v5 }
   0xe   :  { %54 = vmatpush.msra.mxu0 %v39_v6  ;;  %161 = vmatpush.msra.mxu3 %v39_v6 }
  0x10   :  { %55 = vmatpush.msra.mxu0 %v38_v7  ;;  %162 = vmatpush.msra.mxu3 %v38_v7 }
  0x12   :  { %56 = vmatpush.msra.mxu0 %v37_v8  ;;  %163 = vmatpush.msra.mxu3 %v37_v8 }
  0x14   :  { %57 = vmatpush.msra.mxu0 %v36_v9  ;;  %164 = vmatpush.msra.mxu3 %v36_v9 }
  0x16   :  { %58 = vmatpush.msra.mxu0 %v35_v10  ;;  %165 = vmatpush.msra.mxu3 %v35_v10 }
  0x18   :  { %59 = vmatpush.msra.mxu0 %v34_v11  ;;  %166 = vmatpush.msra.mxu3 %v34_v11 }
  0x1a   :  { %60 = vmatpush.msra.mxu0 %v33_v12  ;;  %167 = vmatpush.msra.mxu3 %v33_v12 }
  0x1c   :  { %61 = vmatpush.msra.mxu0 %v32_v13  ;;  %168 = vmatpush.msra.mxu3 %v32_v13 }
  0x1e   :  { %62 = vmatpush.msra.mxu0 %v31_v14  ;;  %169 = vmatpush.msra.mxu3 %v31_v14 }
  0x20   :  { %63 = vmatpush.msra.mxu0 %v30_v15  ;;  %170 = vmatpush.msra.mxu3 %v30_v15 }
  0x21   :  { %64 = vmatmul.f32.vlgmr.msra.gmra.mxu0 %v837_v16 }
  0x22   :  { %343 = vmatpush.msrb.mxu3 %v45_v0  ;;  %434 = vmatpush.msrb.mxu0 %v45_v0 }
  0x24   :  { %344 = vmatpush.msrb.mxu3 %v44_v1  ;;  %435 = vmatpush.msrb.mxu0 %v44_v1 }
  0x26   :  { %345 = vmatpush.msrb.mxu3 %v43_v2  ;;  %436 = vmatpush.msrb.mxu0 %v43_v2 }
  0x28   :  { %346 = vmatpush.msrb.mxu3 %v42_v3  ;;  %437 = vmatpush.msrb.mxu0 %v42_v3 }
  0x2a   :  { %347 = vmatpush.msrb.mxu3 %v41_v4  ;;  %438 = vmatpush.msrb.mxu0 %v41_v4 }
  0x2c   :  { %348 = vmatpush.msrb.mxu3 %v40_v5  ;;  %439 = vmatpush.msrb.mxu0 %v40_v5 }
  0x2e   :  { %349 = vmatpush.msrb.mxu3 %v39_v6  ;;  %440 = vmatpush.msrb.mxu0 %v39_v6 }
  0x30   :  { %350 = vmatpush.msrb.mxu3 %v38_v7  ;;  %441 = vmatpush.msrb.mxu0 %v38_v7 }
  0x32   :  { %351 = vmatpush.msrb.mxu3 %v37_v8  ;;  %442 = vmatpush.msrb.mxu0 %v37_v8  ;;  %v46_v8 = vld [vmem:[%s1041_s3] sm:$0x1] }
  0x34   :  { %352 = vmatpush.msrb.mxu3 %v36_v9  ;;  %443 = vmatpush.msrb.mxu0 %v36_v9 }
  0x36   :  { %353 = vmatpush.msrb.mxu3 %v35_v10  ;;  %444 = vmatpush.msrb.mxu0 %v35_v10 }
  0x38   :  { %354 = vmatpush.msrb.mxu3 %v34_v11  ;;  %445 = vmatpush.msrb.mxu0 %v34_v11 }
  0x3a   :  { %355 = vmatpush.msrb.mxu3 %v33_v12  ;;  %446 = vmatpush.msrb.mxu0 %v33_v12 }
  0x3c   :  { %356 = vmatpush.msrb.mxu3 %v32_v13  ;;  %447 = vmatpush.msrb.mxu0 %v32_v13  ;;  %v696_v13 = vld [vmem:[%s1043_s1 + $0x38] sm:$0xff] }
  0x3d   :  { %328 = vmatpush.bf16.msra.mxu2 %v696_v13 }
  0x3e   :  { %357 = vmatpush.msrb.mxu3 %v31_v14  ;;  %448 = vmatpush.msrb.mxu0 %v31_v14  ;;  %v695_v14 = vld [vmem:[%s1043_s1 + $0x30] sm:$0xff] }
  0x40   :  { %358 = vmatpush.msrb.mxu3 %v30_v15  ;;  %449 = vmatpush.msrb.mxu0 %v30_v15  ;;  %v694_v15 = vld [vmem:[%s1043_s1 + $0x28] sm:$0xff] }
  0x41   :  { %329 = vmatpush.bf16.msra.mxu2 %v695_v14 }
  0x45   :  { %330 = vmatpush.bf16.msra.mxu2 %v694_v15 }
  0x9e   :  { %v65_v17 = vpop.f32.mrf.mxu0 }
  0x9f   :  { %v69_v18 = vsel %vm1049_vm0, %v65_v17, 0.0  ;;  %v693_v17 = vld [vmem:[%s1043_s1 + $0x20] sm:$0xff] }
  0xa0   :  { %v70_v19 = vrot.slane %v69_v18, 4  ;;  %331 = vmatpush.bf16.msra.mxu2 %v693_v17 }
  0xa2   :  { %v71_v20 = vadd.f32 %v70_v19, %v69_v18  ;;  %v692_v19 = vld [vmem:[%s1043_s1 + $0x18] sm:$0xff] }
  0xa4   :  { %v72_v21 = vrot.slane %v71_v20, 2  ;;  %332 = vmatpush.bf16.msra.mxu2 %v692_v19 }
  0xa6   :  { %v73_v22 = vadd.f32 %v72_v21, %v71_v20 }
  0xa8   :  { %v74_v23 = vrot.slane %v73_v22, 1 }
  0xaa   :  { %v75_v24 = vadd.f32 %v74_v23, %v73_v22  ;;  %v691_v22 = vld [vmem:[%s1043_s1 + $0x10] sm:$0xff]  ;;  %v690_v23 = vld [vmem:[%s1043_s1 + $0x8] sm:$0xff] }
  0xab   :  { %333 = vmatpush.bf16.msra.mxu2 %v691_v22 }
  0xac   :  { %89 = vrot.lane.b32.xlu2 %v75_v24, %s726_s0  ;;  %83 = vrot.lane.b32.xlu1 %v75_v24, %s727_s7 }
  0xad   :  { %77 = vrot.lane.b32.xlu0 %v75_v24, %s728_s17 }
  0xaf   :  { %334 = vmatpush.bf16.msra.mxu2 %v690_v23 }
  0xb4   :  { %92 = vrot.lane.b32.xlu2 %v75_v24, %s729_s18  ;;  %86 = vrot.lane.b32.xlu1 %v75_v24, %s730_s19 }
  0xb5   :  { %80 = vrot.lane.b32.xlu0 %v75_v24, %s731_s20 }
  0xbc   :  { %101 = vrot.lane.b32.xlu2 %v75_v24, %s732_s21  ;;  %98 = vrot.lane.b32.xlu1 %v75_v24, %s733_s22 }
  0xbd   :  { %95 = vrot.lane.b32.xlu0 %v75_v24, %s734_s23 }
  0xc4   :  { %110 = vrot.lane.b32.xlu2 %v75_v24, %s735_s24  ;;  %107 = vrot.lane.b32.xlu1 %v75_v24, %s736_s25 }
  0xc5   :  { %104 = vrot.lane.b32.xlu0 %v75_v24, %s737_s26 }
  0xcc   :  { %119 = vrot.lane.b32.xlu2 %v75_v24, %s738_s27  ;;  %116 = vrot.lane.b32.xlu1 %v75_v24, %s739_s28 }
  0xcd   :  { %113 = vrot.lane.b32.xlu0 %v75_v24, %s740_s29 }
 0x106   :  { %v90_v25 = vpop.permute.xlu2 %89 }
 0x10e   :  { %v93_v28 = vpop.permute.xlu2 %92 }
 0x116   :  { %v102_v35 = vpop.permute.xlu2 %101 }
 0x11e   :  { %v84_v26 = vpop.permute.xlu1 %83  ;;  %v111_v43 = vpop.permute.xlu2 %110 }
 0x11f   :  { %v78_v27 = vpop.permute.xlu0 %77 }
 0x120   :  { %v123_v30 = vsel %vm122_vm1, %v75_v24, %v78_v27  ;;  %v689_v27 = vld [vmem:[%s1043_s1] sm:$0xff] }
 0x121   :  { %335 = vmatpush.bf16.msra.mxu2 %v689_v27 }
 0x126   :  { %v87_v29 = vpop.permute.xlu1 %86  ;;  %v120_v52 = vpop.permute.xlu2 %119 }
 0x127   :  { %v81_v31 = vpop.permute.xlu0 %80 }
 0x128   :  { %v125_v32 = vsel %vm124_vm2, %v123_v30, %v81_v31 }
 0x129   :  { %v127_v33 = vsel %vm126_vm3, %v125_v32, %v84_v26 }
 0x12a   :  { %v129_v34 = vsel %vm128_vm4, %v127_v33, %v87_v29 }
 0x12b   :  { %v131_v37 = vsel %vm130_vm5, %v129_v34, %v90_v25 }
 0x12c   :  { %v133_v39 = vsel %vm132_vm6, %v131_v37, %v93_v28 }
 0x12e   :  { %v99_v36 = vpop.permute.xlu1 %98 }
 0x12f   :  { %v96_v38 = vpop.permute.xlu0 %95 }
 0x130   :  { %v135_v40 = vsel %vm134_vm7, %v133_v39, %v96_v38 }
 0x131   :  { %v137_v41 = vsel %vm136_vm8, %v135_v40, %v99_v36 }
 0x132   :  { %v139_v45 = vsel %vm138_vm9, %v137_v41, %v102_v35 }
 0x136   :  { %v108_v42 = vpop.permute.xlu1 %107 }
 0x137   :  { %v105_v44 = vpop.permute.xlu0 %104 }
 0x138   :  { %v141_v46 = vsel %vm140_vm10, %v139_v45, %v105_v44 }
 0x139   :  { %v143_v47 = vsel %vm142_vm11, %v141_v46, %v108_v42 }
 0x13a   :  { %v145_v49 = vsel %vm144_vm12, %v143_v47, %v111_v43 }
 0x13e   :  { %v117_v48 = vpop.permute.xlu1 %116 }
 0x13f   :  { %v114_v50 = vpop.permute.xlu0 %113 }
 0x140   :  { %v147_v51 = vsel %vm146_vm13, %v145_v49, %v114_v50 }
 0x141   :  { %v149_v53 = vsel %vm1050_vm14, %v147_v51, %v117_v48 }
 0x142   :  { %v151_v54 = vsel %vm1048_vm15, %v149_v53, %v120_v52  ;;  %v720_v53 = vld [vmem:[%s1042_s4] ss:$0 sm:$0xff] }
 0x143   :  { %v152_v55 = vperm.slane %v151_v54, 0 }
 0x145   :  { %v872_v56 = vsub.f32 %v837_v16, %v152_v55 }
 0x147   :  { %v154_v57 = vmul.f32 %v872_v56, %v872_v56 }
 0x149   :  { %171 = vmatmul.f32.vlgmr.msra.gmra.mxu3 %v154_v57 }
 0x1cc   :  { %v172_v58 = vpop.f32.mrf.mxu3 }
 0x1cd   :  { %v175_v59 = vsel %vm1049_vm0, %v172_v58, 0.0 }
 0x1ce   :  { %v176_v60 = vrot.slane %v175_v59, 4 }
 0x1d0   :  { %v177_v61 = vadd.f32 %v176_v60, %v175_v59 }
 0x1d2   :  { %v178_v62 = vrot.slane %v177_v61, 2 }
 0x1d4   :  { %v179_v63 = vadd.f32 %v178_v62, %v177_v61 }
 0x1d6   :  { %v180_v0 = vrot.slane %v179_v63, 1 }
 0x1d8   :  { %v181_v1 = vadd.f32 %v180_v0, %v179_v63 }
 0x1da   :  { %v182_v2 = vadd.f32 1e-05, %v181_v1 }
 0x1dc   :  { %722 = vrsqrt.f32 %v182_v2  ;;  %vm189_vm0 = vweird.f32 %v182_v2 }
 0x1e2   :  { %v723_v3 = vpop.eup %722 }
 0x1e3   :  { %v184_v4 = vmul.f32 %v723_v3, %v182_v2  ;;  %vm190_vm15 = vweird.f32 %v723_v3 }
 0x1e4   :  { %vm191_vm14 = vmor %vm189_vm0, %vm190_vm15  ;;  %vm1051_vm0 = vcmask 916480   ;;  %vm1053_vm15 = vcmask 58368  }
 0x1e5   :  { %v185_v5 = vmul.f32 %v723_v3, %v184_v4 }
 0x1e7   :  { %v186_v6 = vmul.f32 0.5, %v185_v5 }
 0x1e9   :  { %v187_v7 = vsub.f32 1.5, %v186_v6 }
 0x1eb   :  { %v188_v9 = vmul.f32 %v723_v3, %v187_v7 }
 0x1ed   :  { %v192_v10 = vsel %vm191_vm14, %v723_v3, %v188_v9  ;;  %vm1052_vm14 = vcmask 982016  }
 0x1ee   :  { %v193_v11 = vmul.f32 %v192_v10, %v46_v8 }
 0x1f0   :  { %v195_v12 = vperm.slane %v193_v11, 0 }
 0x1f2   :  { %202 = vrot.lane.b32.xlu2 %v195_v12, %s727_s7  ;;  %199 = vrot.lane.b32.xlu1 %v195_v12, %s731_s20 }
 0x1f3   :  { %196 = vrot.lane.b32.xlu0 %v195_v12, %s728_s17 }
 0x1fa   :  { %211 = vrot.lane.b32.xlu2 %v195_v12, %s729_s18  ;;  %208 = vrot.lane.b32.xlu1 %v195_v12, %s726_s0 }
 0x1fb   :  { %205 = vrot.lane.b32.xlu0 %v195_v12, %s730_s19 }
 0x202   :  { %220 = vrot.lane.b32.xlu2 %v195_v12, %s732_s21  ;;  %217 = vrot.lane.b32.xlu1 %v195_v12, %s733_s22 }
 0x203   :  { %214 = vrot.lane.b32.xlu0 %v195_v12, %s734_s23 }
 0x20a   :  { %229 = vrot.lane.b32.xlu2 %v195_v12, %s735_s24  ;;  %226 = vrot.lane.b32.xlu1 %v195_v12, %s736_s25 }
 0x20b   :  { %223 = vrot.lane.b32.xlu0 %v195_v12, %s737_s26 }
 0x212   :  { %238 = vrot.lane.b32.xlu2 %v195_v12, %s738_s27  ;;  %235 = vrot.lane.b32.xlu1 %v195_v12, %s739_s28 }
 0x213   :  { %232 = vrot.lane.b32.xlu0 %v195_v12, %s740_s29 }
 0x24c   :  { %v203_v18 = vpop.permute.xlu2 %202 }
 0x254   :  { %v212_v24 = vpop.permute.xlu2 %211 }
 0x25c   :  { %v221_v32 = vpop.permute.xlu2 %220 }
 0x264   :  { %v200_v20 = vpop.permute.xlu1 %199  ;;  %v230_v40 = vpop.permute.xlu2 %229 }
 0x265   :  { %v197_v21 = vpop.permute.xlu0 %196 }
 0x266   :  { %v241_v25 = vsel %vm122_vm1, %v193_v11, %v197_v21 }
 0x267   :  { %v242_v28 = vsel %vm124_vm2, %v241_v25, %v200_v20 }
 0x268   :  { %v243_v30 = vsel %vm126_vm3, %v242_v28, %v203_v18 }
 0x26c   :  { %v209_v26 = vpop.permute.xlu1 %208  ;;  %v239_v49 = vpop.permute.xlu2 %238 }
 0x26d   :  { %v206_v29 = vpop.permute.xlu0 %205 }
 0x26e   :  { %v244_v31 = vsel %vm128_vm4, %v243_v30, %v206_v29 }
 0x26f   :  { %v245_v33 = vsel %vm130_vm5, %v244_v31, %v209_v26 }
 0x270   :  { %v246_v36 = vsel %vm132_vm6, %v245_v33, %v212_v24 }
 0x274   :  { %v218_v34 = vpop.permute.xlu1 %217 }
 0x275   :  { %v215_v35 = vpop.permute.xlu0 %214 }
 0x276   :  { %v247_v37 = vsel %vm134_vm7, %v246_v36, %v215_v35 }
 0x277   :  { %v248_v38 = vsel %vm136_vm8, %v247_v37, %v218_v34 }
 0x278   :  { %v249_v42 = vsel %vm138_vm9, %v248_v38, %v221_v32 }
 0x27c   :  { %v227_v39 = vpop.permute.xlu1 %226 }
 0x27d   :  { %v224_v41 = vpop.permute.xlu0 %223 }
 0x27e   :  { %v250_v43 = vsel %vm140_vm10, %v249_v42, %v224_v41 }
 0x27f   :  { %v251_v44 = vsel %vm142_vm11, %v250_v43, %v227_v39 }
 0x280   :  { %v252_v46 = vsel %vm144_vm12, %v251_v44, %v230_v40 }
 0x284   :  { %v236_v45 = vpop.permute.xlu1 %235 }
 0x285   :  { %v233_v47 = vpop.permute.xlu0 %232 }
 0x286   :  { %v253_v48 = vsel %vm146_vm13, %v252_v46, %v233_v47 }
 0x287   :  { %v254_v50 = vsel %vm1051_vm0, %v253_v48, %v236_v45 }
 0x288   :  { %v255_v51 = vsel %vm1052_vm14, %v254_v50, %v239_v49 }
 0x289   :  { %v256_v52 = vperm.slane %v255_v51, 0 }
 0x28b   :  { %v257_v54 = vmul.f32 %v256_v52, %v872_v56  ;;  %v341_v52 = vld [vmem:[%s1044_s5] sm:$0x1] }
 0x28d   :  { %v261_v55 = vadd.f32 %v720_v53, %v257_v54 }
 0x28f   :  { %v262_v57 = vmax.f32 %v261_v55, 0.0 }
 0x291   :  { %v263_v58 = vpack.c.bf16 %v262_v57, %v262_v57 }
 0x293   :  { %336 = vmatmul.bf16.vlgmr.msra.gmra.mxu2 %v263_v58  ;;  %v704_v58 = vld [vmem:[%s1046_s2 + $0x38] sm:$0xff] }
 0x294   :  { %607 = vmatpush.bf16.msra.mxu1 %v704_v58 }
 0x316   :  { %v337_v59 = vpop.f32.mrf.mxu2 }
 0x317   :  { %359 = vmatmul.f32.vlgmr.msrb.gmra.mxu3 %v337_v59 }
 0x31e   :  { %v339_v60 = vpop.f32.mrf.mxu2 }
 0x31f   :  { %v702_v60 = vld [vmem:[%s1046_s2 + $0x28] sm:$0xff] }
 0x39a   :  { %v360_v61 = vpop.f32.mrf.mxu3 }
 0x39b   :  { %v363_v62 = vsel %vm1053_vm15, %v360_v61, 0.0  ;;  %v701_v61 = vld [vmem:[%s1046_s2 + $0x20] sm:$0xff] }
 0x39c   :  { %v364_v63 = vrot.slane %v363_v62, 4 }
 0x39e   :  { %v365_v0 = vadd.f32 %v364_v63, %v363_v62  ;;  %v700_v63 = vld [vmem:[%s1046_s2 + $0x18] sm:$0xff] }
 0x3a0   :  { %v366_v1 = vrot.slane %v365_v0, 2 }
 0x3a2   :  { %v367_v2 = vadd.f32 %v366_v1, %v365_v0 }
 0x3a4   :  { %v368_v3 = vrot.slane %v367_v2, 1 }
 0x3a6   :  { %v369_v4 = vadd.f32 %v368_v3, %v367_v2  ;;  %v699_v2 = vld [vmem:[%s1046_s2 + $0x10] sm:$0xff]  ;;  %v698_v3 = vld [vmem:[%s1046_s2 + $0x8] sm:$0xff] }
 0x3a8   :  { %377 = vrot.lane.b32.xlu2 %v369_v4, %s727_s7  ;;  %374 = vrot.lane.b32.xlu1 %v369_v4, %s731_s20 }
 0x3a9   :  { %371 = vrot.lane.b32.xlu0 %v369_v4, %s728_s17 }
 0x3b0   :  { %386 = vrot.lane.b32.xlu2 %v369_v4, %s729_s18  ;;  %383 = vrot.lane.b32.xlu1 %v369_v4, %s726_s0 }
 0x3b1   :  { %380 = vrot.lane.b32.xlu0 %v369_v4, %s730_s19 }
 0x3b8   :  { %395 = vrot.lane.b32.xlu2 %v369_v4, %s732_s21  ;;  %392 = vrot.lane.b32.xlu1 %v369_v4, %s733_s22 }
 0x3b9   :  { %389 = vrot.lane.b32.xlu0 %v369_v4, %s734_s23 }
 0x3c0   :  { %404 = vrot.lane.b32.xlu2 %v369_v4, %s735_s24  ;;  %401 = vrot.lane.b32.xlu1 %v369_v4, %s736_s25 }
 0x3c1   :  { %398 = vrot.lane.b32.xlu0 %v369_v4, %s737_s26 }
 0x3c8   :  { %413 = vrot.lane.b32.xlu2 %v369_v4, %s738_s27  ;;  %410 = vrot.lane.b32.xlu1 %v369_v4, %s739_s28 }
 0x3c9   :  { %407 = vrot.lane.b32.xlu0 %v369_v4, %s740_s29 }
 0x402   :  { %v378_v56 = vpop.permute.xlu2 %377 }
 0x40a   :  { %v387_v7 = vpop.permute.xlu2 %386 }
 0x412   :  { %v396_v14 = vpop.permute.xlu2 %395 }
 0x41a   :  { %v375_v5 = vpop.permute.xlu1 %374  ;;  %v405_v23 = vpop.permute.xlu2 %404 }
 0x41b   :  { %v372_v6 = vpop.permute.xlu0 %371 }
 0x41c   :  { %v416_v8 = vsel %vm122_vm1, %v369_v4, %v372_v6  ;;  %v697_v6 = vld [vmem:[%s1046_s2] sm:$0xff] }
 0x41d   :  { %v417_v10 = vsel %vm124_vm2, %v416_v8, %v375_v5 }
 0x41e   :  { %v418_v12 = vsel %vm126_vm3, %v417_v10, %v378_v56 }
 0x422   :  { %v384_v9 = vpop.permute.xlu1 %383  ;;  %v414_v32 = vpop.permute.xlu2 %413 }
 0x423   :  { %v381_v11 = vpop.permute.xlu0 %380 }
 0x424   :  { %v419_v13 = vsel %vm128_vm4, %v418_v12, %v381_v11 }
 0x425   :  { %v420_v15 = vsel %vm130_vm5, %v419_v13, %v384_v9 }
 0x426   :  { %v421_v19 = vsel %vm132_vm6, %v420_v15, %v387_v7 }
 0x42a   :  { %v393_v17 = vpop.permute.xlu1 %392 }
 0x42b   :  { %v390_v18 = vpop.permute.xlu0 %389 }
 0x42c   :  { %v422_v20 = vsel %vm134_vm7, %v421_v19, %v390_v18 }
 0x42d   :  { %v423_v21 = vsel %vm136_vm8, %v422_v20, %v393_v17 }
 0x42e   :  { %v424_v25 = vsel %vm138_vm9, %v423_v21, %v396_v14 }
 0x432   :  { %v402_v22 = vpop.permute.xlu1 %401 }
 0x433   :  { %v399_v24 = vpop.permute.xlu0 %398 }
 0x434   :  { %v425_v26 = vsel %vm140_vm10, %v424_v25, %v399_v24 }
 0x435   :  { %v426_v27 = vsel %vm142_vm11, %v425_v26, %v402_v22 }
 0x436   :  { %v427_v29 = vsel %vm144_vm12, %v426_v27, %v405_v23 }
 0x43a   :  { %v411_v28 = vpop.permute.xlu1 %410 }
 0x43b   :  { %v408_v30 = vpop.permute.xlu0 %407 }
 0x43c   :  { %v428_v31 = vsel %vm146_vm13, %v427_v29, %v408_v30 }
 0x43d   :  { %v429_v33 = vsel %vm1051_vm0, %v428_v31, %v411_v28 }
 0x43e   :  { %v430_v34 = vsel %vm1052_vm14, %v429_v33, %v414_v32  ;;  %v721_v33 = vld [vmem:[%s1045_s6] ss:$0 sm:$0xff] }
 0x43f   :  { %v431_v35 = vperm.slane %v430_v34, 0 }
 0x441   :  { %v969_v36 = vsub.f32 %v337_v59, %v431_v35  ;;  %v703_v59 = vld [vmem:[%s1046_s2 + $0x30] sm:$0xff] }
 0x442   :  { %608 = vmatpush.bf16.msra.mxu1 %v703_v59 }
 0x443   :  { %v433_v37 = vmul.f32 %v969_v36, %v969_v36 }
 0x445   :  { %450 = vmatmul.f32.vlgmr.msrb.gmra.mxu0 %v433_v37 }
 0x446   :  { %609 = vmatpush.bf16.msra.mxu1 %v702_v60 }
 0x44a   :  { %610 = vmatpush.bf16.msra.mxu1 %v701_v61 }
 0x44e   :  { %611 = vmatpush.bf16.msra.mxu1 %v700_v63 }
 0x452   :  { %612 = vmatpush.bf16.msra.mxu1 %v699_v2 }
 0x456   :  { %613 = vmatpush.bf16.msra.mxu1 %v698_v3 }
 0x45a   :  { %614 = vmatpush.bf16.msra.mxu1 %v697_v6 }
 0x4c2   :  { %v451_v38 = vpop.f32.mrf.mxu0 }
 0x4c3   :  { %v454_v39 = vsel %vm1053_vm15, %v451_v38, 0.0 }
 0x4c4   :  { %v455_v40 = vrot.slane %v454_v39, 4 }
 0x4c6   :  { %v456_v41 = vadd.f32 %v455_v40, %v454_v39 }
 0x4c8   :  { %v457_v42 = vrot.slane %v456_v41, 2 }
 0x4ca   :  { %v458_v43 = vadd.f32 %v457_v42, %v456_v41 }
 0x4cc   :  { %v459_v44 = vrot.slane %v458_v43, 1 }
 0x4ce   :  { %v460_v45 = vadd.f32 %v459_v44, %v458_v43 }
 0x4d0   :  { %v461_v46 = vadd.f32 1e-05, %v460_v45 }
 0x4d2   :  { %724 = vrsqrt.f32 %v461_v46  ;;  %vm468_vm14 = vweird.f32 %v461_v46 }
 0x4d8   :  { %v725_v47 = vpop.eup %724 }
 0x4d9   :  { %v463_v48 = vmul.f32 %v725_v47, %v461_v46  ;;  %vm469_vm0 = vweird.f32 %v725_v47 }
 0x4da   :  { %vm470_vm15 = vmor %vm468_vm14, %vm469_vm0 }
 0x4db   :  { %v464_v49 = vmul.f32 %v725_v47, %v463_v48 }
 0x4dd   :  { %v465_v50 = vmul.f32 0.5, %v464_v49 }
 0x4df   :  { %v466_v51 = vsub.f32 1.5, %v465_v50 }
 0x4e1   :  { %v467_v53 = vmul.f32 %v725_v47, %v466_v51 }
 0x4e3   :  { %v471_v54 = vsel %vm470_vm15, %v725_v47, %v467_v53 }
 0x4e4   :  { %v472_v55 = vmul.f32 %v471_v54, %v341_v52 }
 0x4e6   :  { %v474_v57 = vperm.slane %v472_v55, 0 }
 0x4e8   :  { %481 = vrot.lane.b32.xlu2 %v474_v57, %s727_s7  ;;  %478 = vrot.lane.b32.xlu1 %v474_v57, %s731_s20 }
 0x4e9   :  { %475 = vrot.lane.b32.xlu0 %v474_v57, %s728_s17 }
 0x4f0   :  { %490 = vrot.lane.b32.xlu2 %v474_v57, %s729_s18  ;;  %487 = vrot.lane.b32.xlu1 %v474_v57, %s726_s0 }
 0x4f1   :  { %484 = vrot.lane.b32.xlu0 %v474_v57, %s730_s19 }
 0x4f8   :  { %499 = vrot.lane.b32.xlu2 %v474_v57, %s732_s21  ;;  %496 = vrot.lane.b32.xlu1 %v474_v57, %s733_s22 }
 0x4f9   :  { %493 = vrot.lane.b32.xlu0 %v474_v57, %s734_s23 }
 0x500   :  { %508 = vrot.lane.b32.xlu2 %v474_v57, %s735_s24  ;;  %505 = vrot.lane.b32.xlu1 %v474_v57, %s736_s25 }
 0x501   :  { %502 = vrot.lane.b32.xlu0 %v474_v57, %s737_s26 }
 0x508   :  { %517 = vrot.lane.b32.xlu2 %v474_v57, %s738_s27  ;;  %514 = vrot.lane.b32.xlu1 %v474_v57, %s739_s28 }
 0x509   :  { %511 = vrot.lane.b32.xlu0 %v474_v57, %s740_s29 }
 0x542   :  { %v482_v62 = vpop.permute.xlu2 %481 }
 0x54a   :  { %v491_v4 = vpop.permute.xlu2 %490 }
 0x552   :  { %v500_v11 = vpop.permute.xlu2 %499 }
 0x55a   :  { %v479_v0 = vpop.permute.xlu1 %478  ;;  %v509_v20 = vpop.permute.xlu2 %508 }
 0x55b   :  { %v476_v1 = vpop.permute.xlu0 %475 }
 0x55c   :  { %v520_v56 = vsel %vm122_vm1, %v472_v55, %v476_v1  ;;  %vm1054_vm1 = vcmask 916480  }
 0x55d   :  { %v521_v7 = vsel %vm124_vm2, %v520_v56, %v479_v0  ;;  %vm1055_vm2 = vcmask 982016  }
 0x55e   :  { %v522_v9 = vsel %vm126_vm3, %v521_v7, %v482_v62 }
 0x562   :  { %v488_v5 = vpop.permute.xlu1 %487  ;;  %v518_v29 = vpop.permute.xlu2 %517 }
 0x563   :  { %v485_v8 = vpop.permute.xlu0 %484 }
 0x564   :  { %v523_v10 = vsel %vm128_vm4, %v522_v9, %v485_v8 }
 0x565   :  { %v524_v12 = vsel %vm130_vm5, %v523_v10, %v488_v5 }
 0x566   :  { %v525_v15 = vsel %vm132_vm6, %v524_v12, %v491_v4 }
 0x56a   :  { %v497_v13 = vpop.permute.xlu1 %496 }
 0x56b   :  { %v494_v14 = vpop.permute.xlu0 %493 }
 0x56c   :  { %v526_v17 = vsel %vm134_vm7, %v525_v15, %v494_v14 }
 0x56d   :  { %v527_v18 = vsel %vm136_vm8, %v526_v17, %v497_v13 }
 0x56e   :  { %v528_v22 = vsel %vm138_vm9, %v527_v18, %v500_v11 }
 0x572   :  { %v506_v19 = vpop.permute.xlu1 %505 }
 0x573   :  { %v503_v21 = vpop.permute.xlu0 %502 }
 0x574   :  { %v529_v23 = vsel %vm140_vm10, %v528_v22, %v503_v21 }
 0x575   :  { %v530_v24 = vsel %vm142_vm11, %v529_v23, %v506_v19 }
 0x576   :  { %v531_v26 = vsel %vm144_vm12, %v530_v24, %v509_v20 }
 0x57a   :  { %v515_v25 = vpop.permute.xlu1 %514 }
 0x57b   :  { %v512_v27 = vpop.permute.xlu0 %511 }
 0x57c   :  { %v532_v28 = vsel %vm146_vm13, %v531_v26, %v512_v27 }
 0x57d   :  { %v533_v30 = vsel %vm1054_vm1, %v532_v28, %v515_v25 }
 0x57e   :  { %v534_v31 = vsel %vm1055_vm2, %v533_v30, %v518_v29 }
 0x57f   :  { %v535_v32 = vperm.slane %v534_v31, 0 }
 0x581   :  { %v536_v34 = vmul.f32 %v535_v32, %v969_v36 }
 0x583   :  { %v540_v35 = vadd.f32 %v721_v33, %v536_v34 }
 0x585   :  { %v541_v37 = vmax.f32 %v540_v35, 0.0 }
 0x587   :  { %v542_v38 = vpack.c.bf16 %v541_v37, %v541_v37 }
 0x589   :  { %615 = vmatmul.bf16.vlgmr.msra.gmra.mxu1 %v542_v38 }
 0x606   :  { %v616_v39 = vpop.f32.mrf.mxu1 }
 0x607   :  { %v617_v40 = vadd.f32 %v616_v39, %v837_v16 }
 0x609   :  { %620 = vst [vmem:[%s1047_s8] sm:$0xff] %v617_v40 }
 0x60e   :  { %v618_v41 = vpop.f32.mrf.mxu1 }

</bundles_post_ra>
